<compile_context>
chip_gen: v6e
topology: v6e:2x2x1
jax: 0.10.0
libtpu: 0.0.40
codegen_flags: <defaults>
</compile_context>

<pallas_src>
import functools

import numpy as np
import jax
import jax.numpy as jnp
from jax import lax
from jax.experimental import pallas as pl
from jax.experimental.pallas import tpu as pltpu


def _round_up(x, m):
    return ((x + m - 1) // m) * m


# ---------------------------------------------------------------------------
# Pallas kernel 1: RBF kernel matrix tile (optionally fusing +diag_add on the
# global diagonal):
#   out[i,j] = os^2 * exp(coef * ||a_i - b_j||^2) + diag_add * (gi == gj)
#   coef = -0.5 / ls^2
# Row/col norms aa (TA,1) / bb (1,TN) are precomputed in the wrapper; b is
# passed pre-transposed as (D, N) so the contraction is a plain NN matmul.
# ---------------------------------------------------------------------------
def _rbf_tile_kernel(a_ref, bt_ref, aa_ref, bb_ref, out_ref, *, coef, os2, diag_add):
    a = a_ref[...]                                             # (TA, D)
    bt = bt_ref[...]                                           # (D, TN)
    ab = jnp.dot(a, bt, preferred_element_type=jnp.float32)    # (TA, TN) on MXU
    sq = jnp.maximum(aa_ref[...] + bb_ref[...] - 2.0 * ab, 0.0)
    kmat = os2 * jnp.exp(sq * coef)                            # exp on EUP
    if diag_add != 0.0:
        ta, tn = kmat.shape
        rows = pl.program_id(0) * ta + lax.broadcasted_iota(jnp.int32, (ta, tn), 0)
        cols = pl.program_id(1) * tn + lax.broadcasted_iota(jnp.int32, (ta, tn), 1)
        kmat = jnp.where(rows == cols, kmat + diag_add, kmat)
    out_ref[...] = kmat


def rbf_kernel_matrix(a, b, lengthscale, outputscale, *, noise_diag=0.0,
                      tile_a=512, tile_n=1024):
    """a: (M, D), b: (N, D) -> (M, N) f32 kernel matrix (+ noise_diag on diag)."""
    M, D = a.shape
    N, _ = b.shape
    a = a.astype(jnp.float32)
    bt = b.astype(jnp.float32).T                               # (D, N), lane-dense tiles

    # Tile sizes: sublane multiple of 8 / lane multiple of 128; give the row
    # ("parallel") axis at least 2 blocks when possible (v7x has 2 TensorCores).
    tile_a = min(tile_a, _round_up(M, 8))
    if pl.cdiv(M, tile_a) < 2 and M > 8:
        tile_a = _round_up(pl.cdiv(M, 2), 8)
    tile_n = min(tile_n, _round_up(N, 128))

    aa = jnp.sum(a * a, axis=1, keepdims=True)                 # (M, 1)
    bb = jnp.sum(bt * bt, axis=0, keepdims=True)               # (1, N)

    coef = float(-0.5 / (lengthscale ** 2))
    os2 = float(outputscale ** 2)
    kern = functools.partial(_rbf_tile_kernel, coef=coef, os2=os2,
                             diag_add=float(noise_diag))

    return pl.pallas_call(
        kern,
        out_shape=jax.ShapeDtypeStruct((M, N), jnp.float32),
        grid=(pl.cdiv(M, tile_a), pl.cdiv(N, tile_n)),
        in_specs=[
            pl.BlockSpec((tile_a, D), lambda i, j: (i, 0)),    # rows of a
            pl.BlockSpec((D, tile_n), lambda i, j: (0, j)),    # b^T cols (lane-dense)
            pl.BlockSpec((tile_a, 1), lambda i, j: (i, 0)),    # aa row-norms
            pl.BlockSpec((1, tile_n), lambda i, j: (0, j)),    # bb col-norms
        ],
        out_specs=pl.BlockSpec((tile_a, tile_n), lambda i, j: (i, j)),
        compiler_params=pltpu.CompilerParams(
            dimension_semantics=("parallel", "parallel")),
    )(a, bt, aa, bb)


# ---------------------------------------------------------------------------
# Pallas kernel 2: predictive mean + diagonal variance, streaming only v.
# Grid: (test tiles ["parallel"], n_train tiles ["arbitrary", reduction last]).
#   mu^T[:, jT]  = sum_k beta^T[:, kT] @ v[kT, jT]        (MXU, f32 accumulator)
#   var[0, jT]   = (diag_kss + noise^2) - sum_k sum(v[kT, jT]^2, axis=0)
# diag(K_ss) == outputscale^2 for an RBF kernel, so K_ss is never built.
# ---------------------------------------------------------------------------
def _predict_kernel(betaT_ref, v_ref, mu_ref, var_ref, mu_acc, var_acc, *,
                    diag_plus_noise):
    k = pl.program_id(1)

    @pl.when(k == 0)
    def _():
        mu_acc[...] = jnp.zeros_like(mu_acc)
        var_acc[...] = jnp.zeros_like(var_acc)

    v = v_ref[...]                                              # (TK, TT)
    mu_acc[...] += jnp.dot(betaT_ref[...], v,
                           preferred_element_type=jnp.float32)  # (Mp, TT) on MXU
    var_acc[...] += jnp.sum(v * v, axis=0, keepdims=True)       # (1, TT)

    @pl.when(k == pl.num_programs(1) - 1)
    def _():
        mu_ref[...] = mu_acc[...]
        var_ref[...] = diag_plus_noise - var_acc[...]


def gp_predict(noise_variance, outputscale, beta, v, *, tile_t=512, tile_k=512):
    """beta = L^T @ Alpha: (n_train, m);  v = L^{-1} K_s: (n_train, n_test)."""
    n_train, n_test = v.shape
    m = beta.shape[1]
    m_pad = _round_up(m, 8)                                     # unmasked sublane stores

    tile_t = min(tile_t, _round_up(n_test, 128))
    tile_k = min(tile_k, _round_up(n_train, 128))
    nk_pad = _round_up(n_train, tile_k)

    # Zero-pad the reduction axis so ragged K blocks never pollute the
    # accumulators (test-axis ragged blocks only hit discarded output columns).
    v_p = v.astype(jnp.float32)
    if nk_pad != n_train:
        v_p = jnp.pad(v_p, ((0, nk_pad - n_train), (0, 0)))
    beta_t = jnp.pad(beta.astype(jnp.float32).T,
                     ((0, m_pad - m), (0, nk_pad - n_train)))   # (m_pad, nk_pad)

    diag_plus_noise = float(outputscale ** 2 + noise_variance ** 2)
    kern = functools.partial(_predict_kernel, diag_plus_noise=diag_plus_noise)

    mu_t, var = pl.pallas_call(
        kern,
        out_shape=(jax.ShapeDtypeStruct((m_pad, n_test), jnp.float32),
                   jax.ShapeDtypeStruct((1, n_test), jnp.float32)),
        grid=(pl.cdiv(n_test, tile_t), nk_pad // tile_k),
        in_specs=[
            pl.BlockSpec((m_pad, tile_k), lambda j, k: (0, k)),   # beta^T K-tile
            pl.BlockSpec((tile_k, tile_t), lambda j, k: (k, j)),  # v tile
        ],
        out_specs=(pl.BlockSpec((m_pad, tile_t), lambda j, k: (0, j)),
                   pl.BlockSpec((1, tile_t), lambda j, k: (0, j))),
        scratch_shapes=[pltpu.VMEM((m_pad, tile_t), jnp.float32),
                        pltpu.VMEM((1, tile_t), jnp.float32)],
        compiler_params=pltpu.CompilerParams(
            dimension_semantics=("parallel", "arbitrary")),
    )(beta_t, v_p)

    mu = mu_t[:m].T                                             # (n_test, m)
    cov = jnp.broadcast_to(var[0, :, None], mu.shape)
    return mu, cov


# ---------------------------------------------------------------------------
# CIGP.forward
# ---------------------------------------------------------------------------
def cigp_forward(x_train, y_train, x_test, *, lengthscale, outputscale,
                 noise_variance):
    # K(x_train, x_train) + noise^2 * I, with the diagonal fused in-kernel.
    K = rbf_kernel_matrix(x_train, x_train, lengthscale, outputscale,
                          noise_diag=noise_variance ** 2)
    K_s = rbf_kernel_matrix(x_train, x_test, lengthscale, outputscale)
    # K_ss is not needed: only its diagonal is used, and diag == outputscale^2.

    # TODO(synk): Cholesky / triangular solve have no clean Pallas TPU equivalent.
    L = jnp.linalg.cholesky(K)                                    # lower
    Alpha = jax.scipy.linalg.cho_solve((L, True), y_train.astype(jnp.float32))
    v = jax.scipy.linalg.solve_triangular(L, K_s, lower=True)     # L^{-1} K_s
    beta = L.T @ Alpha                                            # mu = v^T beta

    mu, cov = gp_predict(noise_variance, outputscale, beta, v)
    return jnp.squeeze(mu), cov


# ---------------------------------------------------------------------------
# Pure-JAX reference (mirrors the PyTorch forward exactly)
# ---------------------------------------------------------------------------
def _rbf_ref(a, b, ls, os_):
    sq = jnp.sum((a[:, None, :] - b[None, :, :]) ** 2, axis=-1)
    return (os_ ** 2) * jnp.exp(-0.5 * sq / (ls ** 2))


def cigp_forward_ref(x_train, y_train, x_test, *, lengthscale, outputscale,
                     noise_variance):
    n_train, n_test = x_train.shape[0], x_test.shape[0]
    K = _rbf_ref(x_train, x_train, lengthscale, outputscale) \
        + (noise_variance ** 2) * jnp.eye(n_train)
    K_s = _rbf_ref(x_train, x_test, lengthscale, outputscale)
    K_ss = _rbf_ref(x_test, x_test, lengthscale, outputscale)
    L = jnp.linalg.cholesky(K)
    Alpha = jax.scipy.linalg.cho_solve((L, True), y_train)
    mu = K_s.T @ Alpha
    v = jax.scipy.linalg.solve_triangular(L, K_s, lower=True)
    cov = K_ss - v.T @ v + (noise_variance ** 2) * jnp.eye(n_test)
    cov = jnp.broadcast_to(jnp.diag(cov)[:, None], mu.shape)
    return jnp.squeeze(mu), cov


if __name__ == "__main__":
    # Small deterministic problem: 128 train pts, 64 test pts, D=8 features,
    # M=2 output tasks.
    key = jax.random.PRNGKey(0)
    k1, k2, k3 = jax.random.split(key, 3)
    n_train, n_test, d, m = 128, 64, 8, 2

    x_train = jax.random.normal(k1, (n_train, d), dtype=jnp.float32)
    x_test = jax.random.normal(k2, (n_test, d), dtype=jnp.float32)
    y_train = jax.random.normal(k3, (n_train, m), dtype=jnp.float32)

    # Deterministic "parameters" (module __init__: noise_variance; RBF kernel params)
    lengthscale = 1.0
    outputscale = 1.0
    noise_variance = 0.1

    mu, cov = cigp_forward(x_train, y_train, x_test,
                           lengthscale=lengthscale,
                           outputscale=outputscale,
                           noise_variance=noise_variance)
    jax.block_until_ready((mu, cov))

    mu_ref, cov_ref = cigp_forward_ref(x_train, y_train, x_test,
                                       lengthscale=lengthscale,
                                       outputscale=outputscale,
                                       noise_variance=noise_variance)
    jax.block_until_ready((mu_ref, cov_ref))

    assert mu.shape == (n_test, m) and cov.shape == (n_test, m)
    np.testing.assert_allclose(np.asarray(mu), np.asarray(mu_ref),
                               rtol=1e-4, atol=1e-4)
    np.testing.assert_allclose(np.asarray(cov), np.asarray(cov_ref),
                               rtol=1e-4, atol=1e-4)
    print("KERNEL_OK")
</pallas_src>

<mosaic_0001>
module attributes {stable_mosaic.version = 11 : i64} {
  func.func @_rbf_tile_kernel(%arg0: i32, %arg1: i32, %arg2: memref<64x8xf32, #tpu.memory_space<vmem>>, %arg3: memref<8x128xf32, #tpu.memory_space<vmem>>, %arg4: memref<64x1xf32, #tpu.memory_space<vmem>>, %arg5: memref<1x128xf32, #tpu.memory_space<vmem>>, %arg6: memref<64x128xf32, #tpu.memory_space<vmem>>) attributes {dimension_semantics = [#tpu.dimension_semantics<parallel>, #tpu.dimension_semantics<parallel>], iteration_bounds = array<i64: 2, 1>, scalar_prefetch = 0 : i64, scratch_operands = 0 : i64, tpu.core_type = #tpu.core_type<tc>, window_params = [{transform_indices = @transform_0, window_bounds = array<i64: 64, 8>}, {transform_indices = @transform_1, window_bounds = array<i64: 8, 128>}, {transform_indices = @transform_2, window_bounds = array<i64: 64, 1>}, {transform_indices = @transform_3, window_bounds = array<i64: 1, 128>}, {transform_indices = @transform_4, window_bounds = array<i64: 64, 128>}]} {
    %c0 = arith.constant 0 : index
    %c0_0 = arith.constant 0 : index
    %0 = vector.load %arg2[%c0, %c0_0] : memref<64x8xf32, #tpu.memory_space<vmem>>, vector<64x8xf32>
    %c0_1 = arith.constant 0 : index
    %c0_2 = arith.constant 0 : index
    %1 = vector.load %arg3[%c0_1, %c0_2] : memref<8x128xf32, #tpu.memory_space<vmem>>, vector<8x128xf32>
    %cst = arith.constant dense<0.000000e+00> : vector<64x128xf32>
    %2 = tpu.matmul %0, %1, %cst {dimension_numbers = #tpu.dot_dimension_numbers<[1], [0], [0], [1], [0, 0, 1, 1], [], []>} : vector<64x8xf32>, vector<8x128xf32>, vector<64x128xf32> -> vector<64x128xf32>
    %c0_3 = arith.constant 0 : index
    %c0_4 = arith.constant 0 : index
    %3 = vector.load %arg4[%c0_3, %c0_4] : memref<64x1xf32, #tpu.memory_space<vmem>>, vector<64x1xf32>
    %c0_5 = arith.constant 0 : index
    %c0_6 = arith.constant 0 : index
    %4 = vector.load %arg5[%c0_5, %c0_6] : memref<1x128xf32, #tpu.memory_space<vmem>>, vector<1x128xf32>
    %5 = vector.broadcast %3 : vector<64x1xf32> to vector<64x128xf32>
    %6 = vector.broadcast %4 : vector<1x128xf32> to vector<64x128xf32>
    %7 = arith.addf %5, %6 : vector<64x128xf32>
    %cst_7 = arith.constant 2.000000e+00 : f32
    %8 = vector.broadcast %cst_7 : f32 to vector<64x128xf32>
    %9 = arith.mulf %8, %2 : vector<64x128xf32>
    %10 = arith.subf %7, %9 : vector<64x128xf32>
    %cst_8 = arith.constant 0.000000e+00 : f32
    %11 = vector.broadcast %cst_8 : f32 to vector<64x128xf32>
    %12 = arith.maximumf %10, %11 : vector<64x128xf32>
    %cst_9 = arith.constant -5.000000e-01 : f32
    %13 = vector.broadcast %cst_9 : f32 to vector<64x128xf32>
    %14 = arith.mulf %12, %13 : vector<64x128xf32>
    %15 = math.exp %14 : vector<64x128xf32>
    %cst_10 = arith.constant 1.000000e+00 : f32
    %16 = vector.broadcast %cst_10 : f32 to vector<64x128xf32>
    %17 = arith.mulf %16, %15 : vector<64x128xf32>
    %c64_i32 = arith.constant 64 : i32
    %18 = arith.muli %arg0, %c64_i32 : i32
    %19 = tpu.iota {dimensions = array<i32: 0>} : vector<64x128xi32>
    %20 = vector.broadcast %18 : i32 to vector<64x128xi32>
    %21 = arith.addi %20, %19 : vector<64x128xi32>
    %c128_i32 = arith.constant 128 : i32
    %22 = arith.muli %arg1, %c128_i32 : i32
    %23 = tpu.iota {dimensions = array<i32: 1>} : vector<64x128xi32>
    %24 = vector.broadcast %22 : i32 to vector<64x128xi32>
    %25 = arith.addi %24, %23 : vector<64x128xi32>
    %26 = arith.cmpi eq, %21, %25 : vector<64x128xi32>
    %cst_11 = arith.constant 0.00999999977 : f32
    %27 = vector.broadcast %cst_11 : f32 to vector<64x128xf32>
    %28 = arith.addf %17, %27 : vector<64x128xf32>
    %29 = arith.select %26, %28, %17 : vector<64x128xi1>, vector<64x128xf32>
    %c0_12 = arith.constant 0 : index
    %c0_13 = arith.constant 0 : index
    %30 = vector.load %arg6[%c0_12, %c0_13] : memref<64x128xf32, #tpu.memory_space<vmem>>, vector<64x128xf32>
    tpu.vector_store %arg6[%c0_12, %c0_13], %29 {strides = array<i32>} : memref<64x128xf32, #tpu.memory_space<vmem>>, vector<64x128xf32>,
    return
  }
  func.func @transform_0(%arg0: i32, %arg1: i32) -> (i32, i32) {
    %c0_i32 = arith.constant 0 : i32
    %c0_i32_0 = arith.constant 0 : i32
    return %arg0, %c0_i32 : i32, i32
  }
  func.func @transform_1(%arg0: i32, %arg1: i32) -> (i32, i32) {
    %c0_i32 = arith.constant 0 : i32
    %c0_i32_0 = arith.constant 0 : i32
    return %c0_i32, %arg1 : i32, i32
  }
  func.func @transform_2(%arg0: i32, %arg1: i32) -> (i32, i32) {
    %c0_i32 = arith.constant 0 : i32
    %c0_i32_0 = arith.constant 0 : i32
    return %arg0, %c0_i32 : i32, i32
  }
  func.func @transform_3(%arg0: i32, %arg1: i32) -> (i32, i32) {
    %c0_i32 = arith.constant 0 : i32
    %c0_i32_0 = arith.constant 0 : i32
    return %c0_i32, %arg1 : i32, i32
  }
  func.func @transform_4(%arg0: i32, %arg1: i32) -> (i32, i32) {
    %c0_i32 = arith.constant 0 : i32
    return %arg0, %arg1 : i32, i32
  }
}

</mosaic_0001>

<bundles_post_ra>
// kernel: tpu_custom_call.1
= control target key start
LH: loop header
LB: loop body
LE: loop exit
PB: predicated region body
PF: predicated region fallthrough
CT: control target
= control target key end

     0   :  { %9 = vsyncpa [#allocation3], 0  ;;  %s1080_s0 = inlined_call_operand.vmem [shape: f32[128,8], index: 0, kind: input, shape index: {}]   ;;  %s1081_s1 = inlined_call_operand.vmem [shape: f32[8,128], index: 1, kind: input, shape index: {}]   ;;  %s1082_s2 = inlined_call_operand.vmem [shape: f32[128,1], index: 2, kind: input, shape index: {}]   ;;  %s1083_s3 = inlined_call_operand.vmem [shape: f32[1,128], index: 3, kind: input, shape index: {}]   ;;  %s1084_s4 = inlined_call_operand.hbm [shape: f32[128,128], index: 4, kind: output, shape index: {}]  }
   0x1   :  { %11 = vsyncpa [#allocation3 + $0x1], 0  ;;  %s934_s15 = smov 0   ;;  %s936_s16 = smov 0  }
   0x2   :  { %s938_s17 = smov 0   ;;  %s940_s18 = smov 0  }
   0x3   :  { %s942_s19 = smov 0   ;;  %s944_s20 = smov 0  }
   0x4 LB: > { %s698_s21 = sadd.s32 4294967295, %s903_s20   ;;  %s699_s22 = sadd.s32 4294967294, %s903_s20   ;;  %s903_s20 = sphi %s944_s20, %s17_s20   ;;  %s899_s19 = sphi %s942_s19, %s1091_s19   ;;  %s895_s18 = sphi %s940_s18, %s1090_s18   ;;  %s891_s17 = sphi %s938_s17, %s1089_s17   ;;  %s887_s16 = sphi %s936_s16, %s1088_s16   ;;  %s883_s15 = sphi %s934_s15, %s1087_s15  }
   0x5   : > { %s29_s23 = sadd.s32 1, %s899_s19  ;;  %s142_s24 = sadd.s32 1, %s891_s17 }
   0x6   : > { %p31_p0 = scmp.ge.s32.totalorder %s29_s23, 2  ;;  %p152_p1 = scmp.ne.s32.totalorder %s891_s17, %s887_s16 }
   0x7   : > { %p153_p2 = scmp.eq.s32.totalorder %s698_s21, 1  ;;  %p158_p3 = scmp.ne.s32.totalorder %s887_s16, %s883_s15 }
   0x8   : > { %s1093_s23 = smov (%p31_p0, %s29_s23), 0  ;;  %p159_p5 = scmp.eq.s32.totalorder %s699_s22, 1 }
   0x9   : > { %p974_p4 = por %p153_p2, %p152_p1  ;;  %s137_s26 = ssub.s32 %s899_s19, %s1093_s23 }
   0xa   : > { %p704_p6 = scmp.ge.s32.totalorder %s903_s20, 1  ;;  %p140_p7 = scmp.eq.s32.totalorder %s137_s26, 0 }
   0xb   : > { %p981_p8 = por %p159_p5, %p158_p3  ;;  %p208_p9 = scmp.lt.s32.totalorder %s903_s20, 3 }
   0xc   : > { %s987_s28 = scalar_select %p140_p7, %s891_s17, %s142_s24  }
   0xd   : > { %p209_p10 = pnand %p704_p6, %p208_p9 }
   0xe   : > { %s706_s5 = sshll.u32 (!%p209_p10), %s895_s18, 3  ;;  %s719_s21 = sshll.u32 (!%p209_p10), %s895_s18, 6 }
   0xf   : > { %212 = sbr.rel (%p209_p10) target bundleno = 266 (0x10a), region = 36  ;;  %p247_p11 = scmp.lt.s32.totalorder (!%p209_p10), %s706_s5, 15 }
  0x10   : > { %s243_s22 = sand.u32 (!%p209_p10), 1, %s887_s16   ;;  %s725_s29 = sshll.u32 (!%p209_p10), %s895_s18, 10 }
  0x11   : > { %s705_s24 = sshll.u32 (!%p209_p10), %s243_s22, 6  ;;  %s1026_s18 = scalar_lea.hbm (!%p209_p10), %s1084_s4, %s725_s29 }
  0x12   : > { %s1014_s26 = scalar_lea.vmem (!%p209_p10), [#allocation2], %s705_s24  ;;  %s1035_s7 = scalar_lea.sflag (!%p209_p10), [#allocation3], %s243_s22 }
  0x13   : > { %s587_s30 = sshll.u32 (!%p209_p10), %s1014_s26, 4  ;;  %s1028_s30 = int_to_ptr.vmem [resolvable:$true] %s587_s30 }
  0x14   : > { %v274_v0 = vld [vmem:[%s1081_s1] sm:$0xff]  ;;  %s1095_s5 = smov (!%p247_p11, %s706_s5), 15  ;;  %v905_v1 = vmov 0   ;;  %vm275_vm0 = vcmask 64512   ;;  %v517_v43 = vlaneseq  ;;  %s827_s8 = scalar_lea.vmem %s1028_s30, 1024 }
  0x15   : > { %735 = vmatprep.subr.mxu0 %v274_v0  ;;  %749 = vmatprep.subr.mxu1 %v274_v0  ;;  %s707_s6 = sshll.u32 %s1095_s5, 3  ;;  %v718_v24 = vld [vmem:[%s1083_s3] ss:$0 sm:$0xff]  ;;  %p828_p12 = scmp.ne.s32.totalorder %s1028_s30, %s827_s8 }
  0x16   : > { %736 = vmatpush3.msra.mxu0 %v274_v0  ;;  %750 = vmatpush3.msra.mxu1 %v274_v0  ;;  %s250_s9 = scalar_lea.vmem %s1080_s0, %s707_s6  ;;  %s260_s12 = scalar_lea.vmem %s1082_s2, %s707_s6 }
  0x17   : > { %810 = vset.pattern.permute.xlu1 %v905_v1  ;;  %809 = vset.pattern.permute.xlu0 %v905_v1  ;;  %v266_v2 = vld [vmem:[%s250_s9] sm:$0xff]  ;;  %v267_v4 = vld [vmem:[%s250_s9 + $0x8] sm:$0xff]  ;;  %v268_v6 = vld [vmem:[%s250_s9 + $0x10] sm:$0xff]  ;;  %p829_p13 = pnand %p828_p12, %p974_p4 }
  0x18   : > { %v270_v3 = vld [vmem:[%s250_s9 + $0x20] sm:$0xff]  ;;  %737 = vmatprep.mubr.msk.f32.mxu0 %vm275_vm0, %v266_v2  ;;  %v271_v5 = vld [vmem:[%s250_s9 + $0x28] sm:$0xff]  ;;  %v272_v7 = vld [vmem:[%s250_s9 + $0x30] sm:$0xff] }
  0x19   : > { %743 = vmatprep.mubr.msk.f32.mxu1 %vm275_vm0, %v270_v3  ;;  %738 = vmatmul.mubr.msk.f32.vlgmr.msra.gmra.mxu0 %vm275_vm0, %v267_v4  ;;  %v407_v8 = vld [vmem:[%s260_s12 + $0x10] sm:$0xff]  ;;  %v269_v9 = vld [vmem:[%s250_s9 + $0x18] sm:$0xff]  ;;  %v405_v11 = vld [vmem:[%s260_s12] sm:$0xff]  ;;  %p830_p0 = pneg %p829_p13 }
  0x1a   : > { %744 = vmatmul.mubr.msk.f32.vlgmr.msra.gmra.mxu1 %vm275_vm0, %v271_v5  ;;  %740 = vmatprep.mubr.msk.f32.mxu0 %vm275_vm0, %v268_v6  ;;  %v273_v10 = vld [vmem:[%s250_s9 + $0x38] sm:$0xff]  ;;  %v406_v13 = vld [vmem:[%s260_s12 + $0x8] sm:$0xff]  ;;  %v409_v15 = vld [vmem:[%s260_s12 + $0x20] sm:$0xff]  ;;  %s906_s9 = smov [#allocation2]  }
  0x1b   : > { %746 = vmatprep.mubr.msk.f32.mxu1 %vm275_vm0, %v272_v7  ;;  %426 = vperm.xlu1 %810, %v407_v8   ;;  %v408_v12 = vld [vmem:[%s260_s12 + $0x18] sm:$0xff]  ;;  %v410_v14 = vld [vmem:[%s260_s12 + $0x28] sm:$0xff]  ;;  %v411_v17 = vld [vmem:[%s260_s12 + $0x30] sm:$0xff]  ;;  %v518_v8 = vshrl.u32 %v517_v43, 7  ;;  %s831_s10 = sshll.u32 %s906_s9, 4  ;;  %s832_s10 = int_to_ptr.vmem [resolvable:$false] %s831_s10 }
  0x1c   : > { %416 = vperm.xlu0 %809, %v405_v11   ;;  %v412_v16 = vld [vmem:[%s260_s12 + $0x38] sm:$0xff]  ;;  %s833_s11 = scalar_lea.vmem %s832_s10, 2048  ;;  %p834_p1 = scmp.lt.s32.totalorder %s1028_s30, %s832_s10 }
  0x1d   : > { %741 = vmatmul.mubr.msk.f32.gmra.mxu0 %vm275_vm0, %v269_v9  ;;  %p835_p2 = scmp.lt.s32.totalorder %s833_s11, %s827_s8 }
  0x1e   : > { %747 = vmatmul.mubr.msk.f32.gmra.mxu1 %vm275_vm0, %v273_v10 }
  0x1f   : > { %431 = vperm.xlu1 %810, %v408_v12   ;;  %p836_p3 = por %p835_p2, %p834_p1 }
  0x20   : > { %421 = vperm.xlu0 %809, %v406_v13  }
  0x21   : > { %p837_p5 = pnand %p836_p3, %p830_p0 }
  0x23   : > { %441 = vperm.xlu1 %810, %v410_v14  }
  0x24   : > { %436 = vperm.xlu0 %809, %v409_v15  }
  0x27   : > { %451 = vperm.xlu1 %810, %v412_v16  }
  0x28   : > { %446 = vperm.xlu0 %809, %v411_v17  }
  0x96   : > { %v427_v18 = vpop.permute.xlu1 %426 }
  0x97   : > { %v417_v19 = vpop.permute.xlu0 %416  ;;  %v462_v41 = vadd.f32 %v718_v24, %v427_v18 }
  0x98   : > { %v460_v31 = vadd.f32 %v718_v24, %v417_v19  ;;  %v519_v19 = vadd.s32 8, %v518_v8 }
  0x9a   : > { %v432_v20 = vpop.permute.xlu1 %431 }
  0x9b   : > { %v422_v21 = vpop.permute.xlu0 %421  ;;  %v463_v42 = vadd.f32 %v718_v24, %v432_v20 }
  0x9c   : > { %v461_v27 = vadd.f32 %v718_v24, %v422_v21  ;;  %v526_v21 = vstv %s719_s21 }
  0x9e   : > { %v442_v22 = vpop.permute.xlu1 %441 }
  0x9f   : > { %v437_v23 = vpop.permute.xlu0 %436  ;;  %v465_v28 = vadd.f32 %v718_v24, %v442_v22  ;;  %v523_v22 = vadd.s32 40, %v518_v8 }
  0xa0   : > { %v464_v32 = vadd.f32 %v718_v24, %v437_v23 }
  0xa2   : > { %v452_v35 = vpop.permute.xlu1 %451 }
  0xa3   : > { %v447_v36 = vpop.permute.xlu0 %446  ;;  %v467_v50 = vadd.f32 %v718_v24, %v452_v35 }
  0xa4   : > { %v466_v51 = vadd.f32 %v718_v24, %v447_v36  ;;  %v522_v24 = vadd.s32 32, %v518_v8 }
  0xd9   : > { %v739_v25 = vpop.f32.mrf.mxu0 }
  0xda   : > { %v745_v26 = vpop.f32.mrf.mxu1  ;;  %v469_v29 = vmul.f32 2.0, %v739_v25  ;;  %v528_v25 = vadd.s32 %v526_v21, %v519_v19 }
  0xdb   : > { %v473_v30 = vmul.f32 2.0, %v745_v26  ;;  %v366_v33 = vpop.f32.mrf.mxu0  ;;  %v537_v26 = vand.u32 127, %v517_v43 }
  0xdc   : > { %v386_v34 = vpop.f32.mrf.mxu1  ;;  %v477_v37 = vsub.f32 %v461_v27, %v469_v29  ;;  %v468_v39 = vmul.f32 2.0, %v366_v33  ;;  %v532_v27 = vadd.s32 %v526_v21, %v523_v22  ;;  %v527_v29 = vadd.s32 %v526_v21, %v518_v8 }
  0xdd   : > { %v481_v38 = vsub.f32 %v465_v28, %v473_v30  ;;  %v472_v40 = vmul.f32 2.0, %v386_v34  ;;  %v742_v44 = vpop.f32.mrf.mxu0  ;;  %v521_v28 = vadd.s32 24, %v518_v8  ;;  %v525_v30 = vadd.s32 56, %v518_v8 }
  0xde   : > { %v748_v45 = vpop.f32.mrf.mxu1  ;;  %v485_v46 = vmax.f32 %v477_v37, 0.0  ;;  %v476_v48 = vsub.f32 %v460_v31, %v468_v39  ;;  %v471_v52 = vmul.f32 2.0, %v742_v44  ;;  %v531_v31 = vadd.s32 %v526_v21, %v522_v24 }
  0xdf   : > { %v489_v47 = vmax.f32 %v481_v38, 0.0  ;;  %v480_v49 = vsub.f32 %v464_v32, %v472_v40  ;;  %v475_v53 = vmul.f32 2.0, %v748_v45  ;;  %v376_v54 = vpop.f32.mrf.mxu0  ;;  %v520_v32 = vadd.s32 16, %v518_v8 }
  0xe0   : > { %v396_v55 = vpop.f32.mrf.mxu1  ;;  %v493_v56 = vmul.f32 -0.5, %v485_v46  ;;  %v484_v58 = vmax.f32 %v476_v48, 0.0  ;;  %v479_v60 = vsub.f32 %v463_v42, %v471_v52  ;;  %v470_v62 = vmul.f32 2.0, %v376_v54 }
  0xe1   : > { %v497_v57 = vmul.f32 -0.5, %v489_v47  ;;  %v488_v59 = vmax.f32 %v480_v49, 0.0  ;;  %v483_v61 = vsub.f32 %v467_v50, %v475_v53  ;;  %v474_v63 = vmul.f32 2.0, %v396_v55 }
  0xe2   : > { %v502_v0 = vmul.f32 1.442695, %v493_v56  ;;  %v492_v2 = vmul.f32 -0.5, %v484_v58  ;;  %v487_v4 = vmax.f32 %v479_v60, 0.0  ;;  %v478_v6 = vsub.f32 %v462_v41, %v470_v62 }
  0xe3   : > { %v510_v1 = vmul.f32 1.442695, %v497_v57  ;;  %v496_v3 = vmul.f32 -0.5, %v488_v59  ;;  %v491_v5 = vmax.f32 %v483_v61, 0.0  ;;  %v482_v7 = vsub.f32 %v466_v51, %v474_v63 }
  0xe4   : > { %811 = vpow2.f32 %v502_v0  ;;  %v500_v9 = vmul.f32 1.442695, %v492_v2  ;;  %v495_v11 = vmul.f32 -0.5, %v487_v4  ;;  %v486_v13 = vmax.f32 %v478_v6, 0.0 }
  0xe5   : > { %v508_v10 = vmul.f32 1.442695, %v496_v3  ;;  %813 = vpow2.f32 %v510_v1  ;;  %v499_v12 = vmul.f32 -0.5, %v491_v5  ;;  %v490_v14 = vmax.f32 %v482_v7, 0.0 }
  0xe6   : > { %815 = vpow2.f32 %v500_v9  ;;  %v506_v15 = vmul.f32 1.442695, %v495_v11  ;;  %v494_v17 = vmul.f32 -0.5, %v486_v13  ;;  %vm541_vm1 = vcmp.eq.s32.totalorder %v528_v25, %v537_v26 }
  0xe7   : > { %817 = vpow2.f32 %v508_v10  ;;  %v514_v16 = vmul.f32 1.442695, %v499_v12  ;;  %v498_v18 = vmul.f32 -0.5, %v490_v14  ;;  %v524_v34 = vadd.s32 48, %v518_v8 }
  0xe8   : > { %819 = vpow2.f32 %v506_v15  ;;  %v504_v20 = vmul.f32 1.442695, %v494_v17  ;;  %vm545_vm2 = vcmp.eq.s32.totalorder %v532_v27, %v537_v26  ;;  %v530_v37 = vadd.s32 %v526_v21, %v521_v28 }
  0xe9   : > { %821 = vpow2.f32 %v514_v16  ;;  %v512_v23 = vmul.f32 1.442695, %v498_v18  ;;  %vm540_vm3 = vcmp.eq.s32.totalorder %v527_v29, %v537_v26  ;;  %v534_v40 = vadd.s32 %v526_v21, %v525_v30 }
  0xea   : > { %823 = vpow2.f32 %v504_v20  ;;  %vm544_vm4 = vcmp.eq.s32.totalorder %v531_v31, %v537_v26  ;;  %v529_v44 = vadd.s32 %v526_v21, %v520_v32  ;;  %v533_v47 = vadd.s32 %v526_v21, %v524_v34 }
  0xeb   : > { %825 = vpow2.f32 %v512_v23  ;;  %vm543_vm5 = vcmp.eq.s32.totalorder %v530_v37, %v537_v26  ;;  %vm547_vm6 = vcmp.eq.s32.totalorder %v534_v40, %v537_v26 }
  0xec   : > { %vm542_vm7 = vcmp.eq.s32.totalorder %v529_v44, %v537_v26  ;;  %vm546_vm8 = vcmp.eq.s32.totalorder %v533_v47, %v537_v26 }
  0xf1   : > { %v812_v33 = vpop.eup %811 }
  0xf2   : > { %v814_v35 = vpop.eup %813  ;;  %v549_v36 = vadd.f32 0.01, %v812_v33 }
  0xf3   : > { %v816_v38 = vpop.eup %815  ;;  %v553_v39 = vadd.f32 0.01, %v814_v35 }
  0xf4   : > { %v818_v41 = vpop.eup %817  ;;  %v557_v42 = vsel %vm541_vm1, %v549_v36, %v812_v33  ;;  %v548_v43 = vadd.f32 0.01, %v816_v38 }
  0xf5   : > { %565 = vst [vmem:[%s1014_s26 + $0x8] sm:$0xff] %v557_v42  ;;  %v561_v45 = vsel %vm545_vm2, %v553_v39, %v814_v35  ;;  %v552_v46 = vadd.f32 0.01, %v818_v41  ;;  %v820_v48 = vpop.eup %819 }
  0xf6   : > { %569 = vst [vmem:[%s1014_s26 + $0x28] sm:$0xff] %v561_v45  ;;  %v556_v49 = vsel %vm540_vm3, %v548_v43, %v816_v38  ;;  %v822_v50 = vpop.eup %821  ;;  %v551_v52 = vadd.f32 0.01, %v820_v48 }
  0xf7   : > { %564 = vst [vmem:[%s1014_s26] sm:$0xff] %v556_v49  ;;  %v560_v51 = vsel %vm544_vm4, %v552_v46, %v818_v41  ;;  %v824_v53 = vpop.eup %823  ;;  %v555_v54 = vadd.f32 0.01, %v822_v50 }
  0xf8   : > { %568 = vst [vmem:[%s1014_s26 + $0x20] sm:$0xff] %v560_v51  ;;  %v826_v55 = vpop.eup %825  ;;  %v559_v56 = vsel %vm543_vm5, %v551_v52, %v820_v48  ;;  %v550_v57 = vadd.f32 0.01, %v824_v53 }
  0xf9   : > { %567 = vst [vmem:[%s1014_s26 + $0x18] sm:$0xff] %v559_v56  ;;  %v563_v58 = vsel %vm547_vm6, %v555_v54, %v822_v50  ;;  %v554_v59 = vadd.f32 0.01, %v826_v55 }
  0xfa   : > { %571 = vst [vmem:[%s1014_s26 + $0x38] sm:$0xff] %v563_v58  ;;  %v558_v60 = vsel %vm542_vm7, %v550_v57, %v824_v53 }
  0xfb   : > { %566 = vst [vmem:[%s1014_s26 + $0x10] sm:$0xff] %v558_v60  ;;  %v562_v61 = vsel %vm546_vm8, %v554_v59, %v826_v55 }
  0xfc   : > { %570 = vst [vmem:[%s1014_s26 + $0x30] sm:$0xff] %v562_v61 }
  0xfd   : > { %840 = shalt.err (!%p837_p5)
}
  0xfe   : > { %s841_s12 = scalar_lea.hbm %s1026_s18, 1024  ;;  %s845_s21 = scalar_lea.hbm %s1084_s4, 2048 }
  0xff   : > { %p842_p6 = scmp.ne.s32.totalorder %s1026_s18, %s841_s12  ;;  %p846_p10 = scmp.lt.s32.totalorder %s1026_s18, %s1084_s4 }
 0x100   : > { %p847_p11 = scmp.lt.s32.totalorder %s845_s21, %s841_s12 }
 0x101   : > { %p843_p7 = pnand %p842_p6, %p974_p4 }
 0x102   : > { %p848_p12 = por %p847_p11, %p846_p10 }
 0x103   : > { %p844_p9 = pneg %p843_p7 }
 0x105   : > { %p849_p13 = pnand %p848_p12, %p844_p9 }
 0x107   : > { %852 = shalt.err (!%p849_p13)
}
 0x108   : > { %s907_s26 = smov 128   ;;  %s908_s29 = smov 8  }
 0x109   : > { %751 = dma.vmem_to_hbm [thread:$0]  (%p974_p4), %s1028_s30, 1024, %s1026_s18, %s1035_s7, %s907_s26, %s907_s26, %s908_s29  }
 0x10a PF: > { %p757_p0 = scmp.ge.s32.totalorder %s903_s20, 2  ;;  %s602_s5 = sand.u32 1, %s883_s15  }
 0x10b   : > { %s603_s6 = scalar_lea.sflag [#allocation3], %s602_s5 }
 0x10c   : > { %p754_p1 = pnand %p757_p0, %p981_p8 }
 0x10e   : > { %p755_p2 = pneg %p754_p1 }
 0x110   : > { %878 = dma.done.wait (%p755_p2), %s603_s6, 1024  }
 0x111   : > { %880 = vsyncadd (%p755_p2), %s603_s6, 4294966272  ;;  %s17_s20 = sadd.s32 1, %s903_s20   ;;  %s1087_s15 = smov %s887_s16 }
 0x112   : > { %p14_p3 = scmp.ge.s32.totalorder %s17_s20, 4   ;;  %s1088_s16 = smov %s891_s17 }
 0x113   : > { %s1089_s17 = smov %s987_s28  ;;  %s1090_s18 = smov %s899_s19 }
 0x114   : > { %s1091_s19 = smov %s1093_s23  ;;  %16 = sbr.rel (!%p14_p3) target bundleno = 4 (0x4), region = 80 }
 0x119   :  { %608 = vsyncpa [#allocation3], 1 }
 0x11a   :  { %610 = vsyncpa [#allocation3 + $0x1], 1 }

</bundles_post_ra>
